<compile_context>
chip_gen: v6e
topology: v6e:2x2x1
jax: 0.10.0
libtpu: 0.0.40
codegen_flags: <defaults>
</compile_context>

<pallas_src>
import functools

import jax
import jax.numpy as jnp
import numpy as np
from jax import lax
from jax.experimental import pallas as pl
from jax.experimental.pallas import tpu as pltpu

_EPS = 1e-8
_LANE = 128


def _round_up(n, m):
    return ((n + m - 1) // m) * m


def _itemsize(dt):
    return np.dtype(dt).itemsize


@functools.lru_cache(maxsize=None)
def _vmem_budget_bytes():
    """Generation-aware VMEM budget (~75% of per-core physical VMEM).

    v5e/v6e (128 MiB) -> ~96 MiB, v7x (64 MiB) -> ~48 MiB.  Conservative
    48 MiB fallback if the hardware query is unavailable.
    """
    fallback = 48 * 1024 * 1024
    try:
        info = pltpu.get_tpu_info()
        for name in ("vmem_capacity_bytes", "vmem_bytes", "vmem_size_bytes"):
            cap = getattr(info, name, None)
            if cap:
                return int(int(cap) * 3 // 4)
    except Exception:
        pass
    return fallback


# ---------------------------------------------------------------------------
# Kernels
# ---------------------------------------------------------------------------
def _row_normalize_kernel(x_ref, o_ref, *, scale):
    """o = scale * x / max(||x||_2, eps), row-wise over the last (lane) axis."""
    x = x_ref[...].astype(jnp.float32)                       # (tile_m, H)
    ss = jnp.sum(x * x, axis=-1, keepdims=True)              # (tile_m, 1)
    inv = scale / jnp.maximum(jnp.sqrt(ss), _EPS)            # matches the torch eps rule
    o_ref[...] = (x * inv).astype(o_ref.dtype)


def _pairwise_dot_kernel(xn_ref, yn_ref, o_ref, *, split_f32):
    """o[i, j] = <xn[i], yn[j]>, MXU matmul with f32 accumulation.

    split_f32=True : operands are f32 -> in-kernel bf16 hi/lo split and three
                     single-pass bf16 matmuls (bf16_3x): near-f32 accuracy at
                     ~2x the throughput of a 6-pass f32 (HIGHEST) matmul.
    split_f32=False: operands are already bf16 -> one MXU pass.
    """
    dims = (((1,), (1,)), ((), ()))          # contract feature axis (q @ k.T pattern)
    if split_f32:
        x = xn_ref[...]                      # (tm, H) f32
        y = yn_ref[...]                      # (tn, H) f32
        xh = x.astype(jnp.bfloat16)
        yh = y.astype(jnp.bfloat16)
        xl = (x - xh.astype(jnp.float32)).astype(jnp.bfloat16)
        yl = (y - yh.astype(jnp.float32)).astype(jnp.bfloat16)
        s = lax.dot_general(xh, yh, dims, preferred_element_type=jnp.float32)
        s += lax.dot_general(xl, yh, dims, preferred_element_type=jnp.float32)
        s += lax.dot_general(xh, yl, dims, preferred_element_type=jnp.float32)
    else:
        s = lax.dot_general(xn_ref[...], yn_ref[...], dims,
                            preferred_element_type=jnp.float32)
    o_ref[...] = s.astype(o_ref.dtype)       # 1/temp already folded into xn


def _cos_rows_kernel(x_ref, y_ref, o_ref, *, inv_temp):
    """Row-wise cosine / temp; rows regrouped as (tr, 128, H) -> lane-dense out."""
    x = x_ref[...].astype(jnp.float32)                       # (tr, 128, H)
    y = y_ref[...].astype(jnp.float32)
    dot = jnp.sum(x * y, axis=-1)                            # (tr, 128)
    nx = jnp.maximum(jnp.sqrt(jnp.sum(x * x, axis=-1)), _EPS)
    ny = jnp.maximum(jnp.sqrt(jnp.sum(y * y, axis=-1)), _EPS)
    o_ref[...] = (dot / (nx * ny) * inv_temp)[None].astype(o_ref.dtype)


# ---------------------------------------------------------------------------
# Tile selection (VMEM-budget aware)
# ---------------------------------------------------------------------------
def _pick_norm_tile(b, h, in_isz, out_isz, sub, budget):
    cap = min(512, _round_up(b, sub))
    cands = sorted({cap, *(v for v in (512, 256, 128, 64, 32, 16, 8)
                           if v <= cap and v % sub == 0)}, reverse=True)
    limit = int(budget * 0.4)
    tile = cands[-1]
    for t in cands:
        if 2 * t * h * (in_isz + out_isz) <= limit:
            tile = t
            break
    return b if tile > b else tile           # full-dim block for tiny batches


def _pick_pairwise_tiles(b1, b2, h, op_isz, out_isz, sub, budget):
    limit = int(budget * 0.8)

    def fits(tm, tn):
        io = 2 * (tm + tn) * h * op_isz                  # double-buffered input blocks
        tmp = (tm + tn) * h * 4 if op_isz == 4 else 0    # in-kernel hi/lo bf16 copies
        out = 2 * tm * tn * out_isz + tm * tn * 4        # double-buffered out + f32 acc
        return io + tmp + out <= limit

    tm_cap = min(512, _round_up(b1, sub))
    tn_cap = min(256, _round_up(b2, _LANE))
    tm_cands = sorted({tm_cap, *(v for v in (512, 256, 128, 64, 32, 16, 8)
                                 if v <= tm_cap and v % sub == 0)}, reverse=True)

    tn = tn_cap
    tm = next((t for t in tm_cands if fits(t, tn)), None)
    if (tm is None or tm < 64) and tn > _LANE:           # prefer a bigger tm over tn=256
        tm_alt = next((t for t in tm_cands if fits(t, _LANE)), None)
        if tm_alt is not None and (tm is None or tm_alt > tm):
            tm, tn = tm_alt, _LANE
    if tm is None:
        # TODO(synk): tile the feature axis with a VMEM accumulator for H so large
        # that even the minimal (sub, 128) blocks overflow the VMEM budget.
        tm, tn = tm_cands[-1], _LANE

    # Tiny batches: use full-dim blocks (no oversized ragged blocks needed).
    if tm > b1:
        tm = b1
    if tn > b2:
        tn = b2

    # v7x has 2 TensorCores: give a tiny problem >= 2 grid steps on a parallel axis.
    if pl.cdiv(b1, tm) == 1 and pl.cdiv(b2, tn) == 1:
        if b1 > sub:
            tm = _round_up(pl.cdiv(b1, 2), sub)
        elif b2 > _LANE:
            tn = _round_up(pl.cdiv(b2, 2), _LANE)
    return tm, tn


# ---------------------------------------------------------------------------
# Wrappers
# ---------------------------------------------------------------------------
def _normalize_rows(x2, scale, out_dtype, budget):
    """x:[M,H] -> scale * x / max(||x||, eps), stored as out_dtype."""
    m, h = x2.shape
    sub = 16 if (_itemsize(out_dtype) == 2 or _itemsize(x2.dtype) == 2) else 8
    tile_m = _pick_norm_tile(m, h, _itemsize(x2.dtype), _itemsize(out_dtype), sub, budget)
    return pl.pallas_call(
        functools.partial(_row_normalize_kernel, scale=scale),
        out_shape=jax.ShapeDtypeStruct((m, h), out_dtype),
        grid=(pl.cdiv(m, tile_m),),                 # ragged last tile handled by Pallas
        in_specs=[pl.BlockSpec((tile_m, h), lambda i: (i, 0))],
        out_specs=pl.BlockSpec((tile_m, h), lambda i: (i, 0)),
        compiler_params=pltpu.CompilerParams(
            dimension_semantics=("parallel",),
            vmem_limit_bytes=budget),
    )(x2)


def _pairwise_similarity(xr, yr, temp, out_dtype, use_bf16, budget):
    """x:[B1,H], y:[B2,H] -> [B1,B2] cosine/temp without materializing the broadcast."""
    b1, h = xr.shape
    b2, _ = yr.shape

    in_dtype = jnp.promote_types(xr.dtype, yr.dtype)
    bf16_ops = bool(use_bf16) or _itemsize(in_dtype) == 2
    op_dtype = jnp.bfloat16 if bf16_ops else jnp.float32

    sub = 16 if (_itemsize(op_dtype) == 2 or _itemsize(out_dtype) == 2) else 8
    tm, tn = _pick_pairwise_tiles(b1, b2, h, _itemsize(op_dtype),
                                  _itemsize(out_dtype), sub, budget)

    inv_temp = float(1.0 / temp)     # temp is a static module hyperparameter
    # Norms computed once per unique row (not once per (i, j) pair); 1/temp is
    # folded into the x side so the matmul epilogue is only a dtype cast.
    xn = _normalize_rows(xr, inv_temp, op_dtype, budget)
    yn = _normalize_rows(yr, 1.0, op_dtype, budget)

    kernel = functools.partial(_pairwise_dot_kernel, split_f32=not bf16_ops)
    return pl.pallas_call(
        kernel,
        out_shape=jax.ShapeDtypeStruct((b1, b2), out_dtype),
        grid=(pl.cdiv(b1, tm), pl.cdiv(b2, tn)),    # ragged edges masked by Pallas
        in_specs=[
            pl.BlockSpec((tm, h), lambda i, j: (i, 0)),
            pl.BlockSpec((tn, h), lambda i, j: (j, 0)),
        ],
        out_specs=pl.BlockSpec((tm, tn), lambda i, j: (i, j)),
        compiler_params=pltpu.CompilerParams(
            dimension_semantics=("parallel", "parallel"),
            vmem_limit_bytes=budget),
    )(xn, yn)


def _elementwise_similarity(x, y, temp, out_dtype, budget):
    """General broadcasting path: row-group reduce with lane-dense output tiles."""
    # TODO(synk): operands that genuinely broadcast against each other (other than
    # the SimCSE [B1,1,H] x [1,B2,H] pattern) are still materialized here; an
    # index-map broadcast would avoid the O(prod(lead)*H) HBM expansion.
    xb, yb = jnp.broadcast_arrays(x, y)
    lead = xb.shape[:-1]
    h = xb.shape[-1]
    m = int(np.prod(lead)) if lead else 1
    x2 = xb.reshape(m, h)
    y2 = yb.reshape(m, h)

    rows = pl.cdiv(m, _LANE)
    in_isz = _itemsize(x2.dtype) + _itemsize(y2.dtype)
    limit = int(budget * 0.45)
    tr = 8
    while tr > 1 and 2 * tr * _LANE * h * in_isz > limit:
        tr //= 2                                  # shrink the row-group block for large H
    # TODO(synk): for extremely large H (even tr=1 over budget) add an H grid axis
    # with a small VMEM accumulator and dimension_semantics (..., "arbitrary").
    tr = max(1, min(tr, rows))
    groups = pl.cdiv(rows, tr)
    rows_p = groups * tr
    m_p = rows_p * _LANE
    if m_p != m:
        pad = ((0, m_p - m), (0, 0))
        x2 = jnp.pad(x2, pad)                     # zero rows -> cosine 0, sliced off below
        y2 = jnp.pad(y2, pad)
    x3 = x2.reshape(rows_p, _LANE, h)
    y3 = y2.reshape(rows_p, _LANE, h)

    kernel = functools.partial(_cos_rows_kernel, inv_temp=float(1.0 / temp))
    out = pl.pallas_call(
        kernel,
        # 3-D output so the (tr, 128) tile always equals the full trailing dims,
        # keeping the layout constraint satisfied for any H-driven tr.
        out_shape=jax.ShapeDtypeStruct((groups, tr, _LANE), jnp.float32),
        grid=(groups,),
        in_specs=[
            pl.BlockSpec((tr, _LANE, h), lambda i: (i, 0, 0)),
            pl.BlockSpec((tr, _LANE, h), lambda i: (i, 0, 0)),
        ],
        out_specs=pl.BlockSpec((1, tr, _LANE), lambda i: (i, 0, 0)),
        compiler_params=pltpu.CompilerParams(
            dimension_semantics=("parallel",),
            vmem_limit_bytes=budget),
    )(x3, y3)

    return out.reshape(m_p)[:m].reshape(lead).astype(out_dtype)


def similarity(x, y, temp, *, use_bf16_matmul=False):
    """Pallas implementation of Similarity(temp).forward(x, y).

    use_bf16_matmul=True stores bf16 normalized rows (half the HBM traffic and a
    single MXU pass) at bf16-level accuracy; by default f32 inputs keep f32
    intermediates and a bf16_3x split matmul for near-f32 accuracy.
    """
    x = jnp.asarray(x)
    y = jnp.asarray(y)
    out_dtype = jnp.promote_types(x.dtype, y.dtype)
    budget = _vmem_budget_bytes()

    # SimCSE pairwise pattern: the broadcast is an outer product over rows, so
    # reformulate as normalize-rows-once + MXU matmul (O(B*H) HBM, not O(B^2*H)).
    if x.ndim == 3 and y.ndim == 3 and x.shape[-1] == y.shape[-1]:
        h = x.shape[-1]
        if x.shape[1] == 1 and y.shape[0] == 1:        # x:[B1,1,H], y:[1,B2,H]
            return _pairwise_similarity(x.reshape(x.shape[0], h),
                                        y.reshape(y.shape[1], h),
                                        temp, out_dtype, use_bf16_matmul, budget)
        if x.shape[0] == 1 and y.shape[1] == 1:        # mirrored ordering
            return _pairwise_similarity(y.reshape(y.shape[0], h),
                                        x.reshape(x.shape[1], h),
                                        temp, out_dtype, use_bf16_matmul, budget)

    return _elementwise_similarity(x, y, temp, out_dtype, budget)


def _reference(x, y, temp):
    xb, yb = jnp.broadcast_arrays(x, y)
    xb = xb.astype(jnp.float32)
    yb = yb.astype(jnp.float32)
    xn = jnp.maximum(jnp.sqrt(jnp.sum(xb * xb, axis=-1)), _EPS)
    yn = jnp.maximum(jnp.sqrt(jnp.sum(yb * yb, axis=-1)), _EPS)
    return jnp.sum(xb * yb, axis=-1) / (xn * yn) / temp


if __name__ == "__main__":
    key = jax.random.PRNGKey(0)
    kx, ky, ka, kb = jax.random.split(key, 4)

    temp = 0.05  # static "parameter" of the module

    # 1) SimCSE usage: x [B,1,H] vs y [1,B,H] -> pairwise matrix [B,B]
    #    exercises normalize-once + bf16_3x MXU matmul.
    B, H = 8, 32
    x = jax.random.normal(kx, (B, 1, H), dtype=jnp.float32)
    y = jax.random.normal(ky, (1, B, H), dtype=jnp.float32)
    out = jax.block_until_ready(similarity(x, y, temp))
    ref = _reference(x, y, temp)
    assert out.shape == (B, B), out.shape
    np.testing.assert_allclose(np.asarray(out), np.asarray(ref), rtol=5e-4, atol=5e-4)

    # 1b) Mirrored argument order hits the other pairwise branch.
    out_m = jax.block_until_ready(similarity(y, x, temp))
    ref_m = _reference(y, x, temp)
    np.testing.assert_allclose(np.asarray(out_m), np.asarray(ref_m), rtol=5e-4, atol=5e-4)

    # 1c) bf16 inputs -> bf16 intermediates + single-pass MXU path.
    xbf = x.astype(jnp.bfloat16)
    ybf = y.astype(jnp.bfloat16)
    out_bf = jax.block_until_ready(similarity(xbf, ybf, temp))
    ref_bf = _reference(xbf.astype(jnp.float32), ybf.astype(jnp.float32), temp)
    np.testing.assert_allclose(np.asarray(out_bf.astype(jnp.float32)), np.asarray(ref_bf),
                               rtol=5e-2, atol=1.5e-1)

    # 2) Same-shape inputs -> general tiled elementwise-reduce path.
    a = jax.random.normal(ka, (4, 8, H), dtype=jnp.float32)
    b = jax.random.normal(kb, (4, 8, H), dtype=jnp.float32)
    out2 = jax.block_until_ready(similarity(a, b, temp))
    ref2 = _reference(a, b, temp)
    assert out2.shape == (4, 8), out2.shape
    np.testing.assert_allclose(np.asarray(out2), np.asarray(ref2), rtol=1e-4, atol=1e-4)

    print("KERNEL_OK")
</pallas_src>

<mosaic_0001>
module attributes {stable_mosaic.version = 11 : i64} {
  func.func @_row_normalize_kernel(%arg0: i32, %arg1: memref<8x32xf32, #tpu.memory_space<vmem>>, %arg2: memref<8x32xf32, #tpu.memory_space<vmem>>) attributes {dimension_semantics = [#tpu.dimension_semantics<parallel>], iteration_bounds = array<i64: 1>, scalar_prefetch = 0 : i64, scratch_operands = 0 : i64, tpu.core_type = #tpu.core_type<tc>, window_params = [{transform_indices = @transform_0, window_bounds = array<i64: 8, 32>}, {transform_indices = @transform_1, window_bounds = array<i64: 8, 32>}]} {
    %c0 = arith.constant 0 : index
    %c0_0 = arith.constant 0 : index
    %0 = vector.load %arg1[%c0, %c0_0] : memref<8x32xf32, #tpu.memory_space<vmem>>, vector<8x32xf32>
    %1 = arith.mulf %0, %0 : vector<8x32xf32>
    %cst = arith.constant dense<0.000000e+00> : vector<8xf32>
    %2 = vector.multi_reduction <add>, %1, %cst [1] : vector<8x32xf32> to vector<8xf32>
    %3 = vector.shape_cast %2 : vector<8xf32> to vector<8x1xf32>
    %4 = math.sqrt %3 : vector<8x1xf32>
    %cst_1 = arith.constant 9.99999993E-9 : f32
    %5 = vector.broadcast %cst_1 : f32 to vector<8x1xf32>
    %6 = arith.maximumf %4, %5 : vector<8x1xf32>
    %cst_2 = arith.constant 2.000000e+01 : f32
    %7 = vector.broadcast %cst_2 : f32 to vector<8x1xf32>
    %8 = arith.divf %7, %6 : vector<8x1xf32>
    %9 = vector.broadcast %8 : vector<8x1xf32> to vector<8x32xf32>
    %10 = arith.mulf %0, %9 : vector<8x32xf32>
    %c0_3 = arith.constant 0 : index
    %c0_4 = arith.constant 0 : index
    %11 = vector.load %arg2[%c0_3, %c0_4] : memref<8x32xf32, #tpu.memory_space<vmem>>, vector<8x32xf32>
    tpu.vector_store %arg2[%c0_3, %c0_4], %10 {strides = array<i32>} : memref<8x32xf32, #tpu.memory_space<vmem>>, vector<8x32xf32>,
    return
  }
  func.func @transform_0(%arg0: i32) -> (i32, i32) {
    %c0_i32 = arith.constant 0 : i32
    %c0_i32_0 = arith.constant 0 : i32
    return %arg0, %c0_i32 : i32, i32
  }
  func.func @transform_1(%arg0: i32) -> (i32, i32) {
    %c0_i32 = arith.constant 0 : i32
    %c0_i32_0 = arith.constant 0 : i32
    return %arg0, %c0_i32 : i32, i32
  }
}

</mosaic_0001>

<bundles_post_ra>
// kernel: tpu_custom_call.1
= control target key start
LH: loop header
LB: loop body
LE: loop exit
PB: predicated region body
PF: predicated region fallthrough
CT: control target
= control target key end

     0   :  { %6 = vsyncpa [#allocation3], 0  ;;  %s124_s0 = inlined_call_operand.hbm [shape: f32[8,32], index: 0, kind: input, shape index: {}]   ;;  %s125_s1 = inlined_call_operand.hbm [shape: f32[8,32], index: 1, kind: output, shape index: {}]  }
   0x1   :  { %7 = vsyncpa [#allocation4], 0  ;;  %s104_s6 = smov [#allocation2]  }
   0x2   :  { %s14_s7 = sshll.u32 %s104_s6, 4  ;;  %s15_s7 = int_to_ptr.vmem [resolvable:$true] %s14_s7 }
   0x3   :  { %s68_s8 = scalar_lea.vmem %s15_s7, 128  ;;  %p73_p1 = scmp.lt.s32.totalorder %s15_s7, %s15_s7 }
   0x4   :  { %p69_p0 = scmp.ne.s32.totalorder %s15_s7, %s68_s8  ;;  %p74_p2 = scmp.lt.s32.totalorder %s68_s8, %s68_s8 }
   0x6   :  { %p75_p3 = por %p74_p2, %p73_p1 }
   0x8   :  { %p76_p4 = pnand %p75_p3, %p69_p0 }
   0xa   :  { %79 = shalt.err (!%p76_p4)
}
   0xb   :  { %17 = dma.hbm_to_vmem [thread:$0]  %s124_s0, 128, %s15_s7, [#allocation3]  }
   0xc   :  { %100 = dma.done.wait [#allocation3], 128  }
   0xd   :  { %101 = vsyncadd [#allocation3], 4294967168  ;;  %v21_v0 = vld [vmem:[#allocation2] sm:$0xff]  ;;  %vm23_vm0 = vcmask 261120   ;;  %s105_s0 = smov [#allocation5]  }
   0xe   :  { %v22_v1 = vmul.f32 %v21_v0, %v21_v0  ;;  %s45_s11 = sshll.u32 %s105_s0, 4  ;;  %s46_s11 = int_to_ptr.vmem [resolvable:$true] %s45_s11 }
   0xf   :  { %s80_s12 = scalar_lea.vmem %s46_s11, 128  ;;  %p85_p6 = scmp.lt.s32.totalorder %s46_s11, %s46_s11 }
  0x10   :  { %v24_v2 = vsel %vm23_vm0, %v22_v1, 0.0  ;;  %p81_p5 = scmp.ne.s32.totalorder %s46_s11, %s80_s12  ;;  %p86_p7 = scmp.lt.s32.totalorder %s80_s12, %s80_s12 }
  0x11   :  { %25 = vadd.xlane.f32.xlu0 %v24_v2 }
  0x12   :  { %p87_p8 = por %p86_p7, %p85_p6 }
  0x14   :  { %p88_p9 = pnand %p87_p8, %p81_p5 }
  0x9a   :  { %v26_v3 = vpop.xlane.xlu0 %25 }
  0x9b   :  { %56 = vrsqrt.f32 %v26_v3  ;;  %vm29_vm1 = vcmp.eq.f32.partialorder %v26_v3, inf  ;;  %v32_v6 = vand.u32 2147483648, %v26_v3  ;;  %vm31_vm2 = vcmp.eq.f32.partialorder %v26_v3, 0.0 }
  0xa8   :  { %v57_v4 = vpop.eup %56 }
  0xa9   :  { %v28_v5 = vmul.f32 %v57_v4, %v26_v3 }
  0xab   :  { %v30_v7 = vsel %vm29_vm1, %v26_v3, %v28_v5 }
  0xac   :  { %v33_v8 = vsel %vm31_vm2, %v32_v6, %v30_v7 }
  0xad   :  { %v34_v9 = vmax.f32 %v33_v8, 1e-08 }
  0xaf   :  { %58 = vrcp.f32 %v34_v9 }
  0xbc   :  { %v59_v10 = vpop.eup %58 }
  0xbd   :  { %v36_v11 = vmul.f32 20.0, %v59_v10 }
  0xbf   :  { %v37_v12 = vmul.f32 %v36_v11, %v21_v0 }
  0xc1   :  { %38 = vst.msk [vmem:[#allocation5] sm:$0xff] %vm23_vm0, %v37_v12 }
  0xc2   :  { %91 = shalt.err (!%p88_p9)
}
  0xc3   :  { %48 = dma.vmem_to_hbm [thread:$0]  %s46_s11, 128, %s125_s1, [#allocation4]  }
  0xc4   :  { %102 = dma.done.wait [#allocation4], 128  }
  0xc5   :  { %103 = vsyncadd [#allocation4], 4294967168 }
  0xc6   :  { %52 = vsyncpa [#allocation3], 1 }
  0xc7   :  { %53 = vsyncpa [#allocation4], 1 }

</bundles_post_ra>
